<compile_context>
chip_gen: v7x
topology: tpu7x:2x2x1
jax: 0.10.0
libtpu: 0.0.40
codegen_flags: <defaults>
</compile_context>

<pallas_src>
import functools
import numpy as np
import jax
import jax.numpy as jnp
from jax.experimental import pallas as pl
from jax.experimental.pallas import tpu as pltpu

RHO = 100.0          # GMoF rho (module default rho=100)
LANES = 128

_VMEM = pl.BlockSpec(memory_space=pltpu.MemorySpace.VMEM)
_SMEM = pl.BlockSpec(memory_space=pltpu.MemorySpace.SMEM)


# ----------------------------------------------------------------------------
# Fused kernel: all GMoF terms + all rot6d L2 terms -> one scalar
# ----------------------------------------------------------------------------
def _rot6d_components(p):
    """p: (3, L) axis-angle (component on sublanes, joint on lanes) -> six (1, L) rows
    of the 6D rotation representation (first two rows of the rotation matrix)."""
    x = p[0:1, :]
    y = p[1:2, :]
    z = p[2:3, :]
    ang = jnp.sqrt(x * x + y * y + z * z)
    half = 0.5 * ang
    small = ang < 1e-6
    safe_ang = jnp.where(small, 1.0, ang)
    sin_over = jnp.where(small, 0.5 - ang * ang / 48.0,
                         jnp.sin(half) * pl.reciprocal(safe_ang, approx=True))
    r = jnp.cos(half)
    i = x * sin_over
    j = y * sin_over
    k = z * sin_over
    two_s = 2.0 * pl.reciprocal(r * r + i * i + j * j + k * k, approx=True)
    return (1.0 - two_s * (j * j + k * k),
            two_s * (i * j - k * r),
            two_s * (i * k + j * r),
            two_s * (i * j + k * r),
            1.0 - two_s * (i * i + k * k),
            two_s * (j * k - i * r))


def _fused_loss_kernel(gmof_ref, rot_ref, o_ref, *, n_rows):
    # ---- GMoF-weighted reprojection / bone-orientation terms ----
    rho2 = RHO * RHO
    g = gmof_ref[...]                                  # (3*n_rows, 128)
    dx = g[0:n_rows, :]
    dy = g[n_rows:2 * n_rows, :]
    w = g[2 * n_rows:3 * n_rows, :]
    sx = dx * dx
    sy = dy * dy
    gm = rho2 * (sx * pl.reciprocal(sx + rho2, approx=True)
                 + sy * pl.reciprocal(sy + rho2, approx=True))
    gmof_total = jnp.sum(w * gm)

    # ---- rot6d L2 terms (standing + temporal smoothing) ----
    rot = rot_ref[...]                                 # (8, 128)
    a = _rot6d_components(rot[0:3, :])
    b = _rot6d_components(rot[3:6, :])
    scale = rot[6:7, :]
    acc = jnp.zeros_like(scale)
    for ca, cb in zip(a, b):
        d = ca - cb
        acc = acc + d * d
    rot_total = jnp.sum(scale * acc)

    o_ref[0, 0] = gmof_total + rot_total


def _fused_loss(gmof_slab, rot_slab, n_rows):
    out = pl.pallas_call(
        functools.partial(_fused_loss_kernel, n_rows=n_rows),
        out_shape=jax.ShapeDtypeStruct((1, 1), jnp.float32),
        in_specs=[_VMEM, _VMEM],
        out_specs=_SMEM,
    )(gmof_slab, rot_slab)
    return out[0, 0]


# ----------------------------------------------------------------------------
# Slab-building helpers (plain jnp, jit-friendly)
# ----------------------------------------------------------------------------
def _to_lane_rows(v, n_rows):
    """1-D vector -> (n_rows, 128) zero-padded lane slab."""
    v = v.astype(jnp.float32)
    pad = n_rows * LANES - v.shape[0]
    if pad:
        v = jnp.pad(v, (0, pad))
    return v.reshape(n_rows, LANES)


def _torch_median(x):
    """torch.median semantics: lower of the two middle elements for even counts."""
    flat = x.reshape(-1)
    return jnp.sort(flat)[(flat.shape[0] - 1) // 2]


# ----------------------------------------------------------------------------
# TemporalSMPLifyLoss (Pallas-backed, single fused kernel call per forward)
# ----------------------------------------------------------------------------
class TemporalSMPLifyLossPallas:
    def __init__(self, loss_type, prev_pose, **kwargs):
        self.loss_type = loss_type
        self.use_joints_conf = kwargs.get('use_joints_conf', True)
        self.use_hands = kwargs.get('use_hands', True)
        self.use_face = kwargs.get('use_face', True)
        self.interpenetration = kwargs.get('interpenetration', False)
        self.data_weight = float(kwargs.get('data_weight', 1.0))
        self.body_pose_weight = float(kwargs.get('body_pose_weight', 0.0))
        self.shape_weight = float(kwargs.get('shape_weight', 0.0))
        self.bending_prior_weight = float(kwargs.get('bending_prior_weight', 0.0))
        self.hand_prior_weight = float(kwargs.get('hand_prior_weight', 0.0))
        self.beta_precomputed = kwargs.get('beta_precomputed', True)
        self.expression_precomputed = kwargs.get('expression_precomputed', True)

        self.body_p1 = np.array([int(e.split(',')[0])
                                 for e in kwargs['body_boneorientation_pairs']], np.int32)
        self.body_p2 = np.array([int(e.split(',')[1])
                                 for e in kwargs['body_boneorientation_pairs']], np.int32)
        hp1 = [int(e.split(',')[0]) for e in kwargs['hand_boneorientation_pairs']]
        hp2 = [int(e.split(',')[1]) for e in kwargs['hand_boneorientation_pairs']]
        self.lhand_p1 = np.array([e + 25 for e in hp1], np.int32)
        self.lhand_p2 = np.array([e + 25 for e in hp2], np.int32)
        self.rhand_p1 = np.array([e + 46 for e in hp1], np.int32)
        self.rhand_p2 = np.array([e + 46 for e in hp2], np.int32)
        self.boneorientation_loss = kwargs.get('boneorientation_loss', False)
        self.left_handpose_path = kwargs.get('left_handpose_path', 'None')
        self.prev_res_path = kwargs.get('prev_res_path')
        self.standing_weight = 50.0 if (self.prev_res_path or loss_type != 'sgnify') else 500.0
        self.lower_body_joints = np.array([11, 22, 23, 24, 14, 19, 20, 21], np.int32)

        self.prev_pose = prev_pose
        self.body_temp_smooth_weight = kwargs.get('body_temp_smooth_weight')
        self.hand_temp_smooth_weight = kwargs.get('hand_temp_smooth_weight')

    # ------------------------------------------------------------------
    def __call__(self, body_model_output, camera, gt_joints, joints_conf,
                 body_model_faces, joint_weights, **kwargs):
        f32 = jnp.float32
        gt_joints = jnp.asarray(gt_joints, f32)
        joints_conf = jnp.asarray(joints_conf, f32)
        joint_weights = jnp.asarray(joint_weights, f32)
        full_pose = jnp.asarray(body_model_output['full_pose'], f32)
        body_pose = full_pose[:, 3:66]
        B = gt_joints.shape[0]

        projected = camera(jnp.asarray(body_model_output['joints'], f32))   # (B, J, 2)
        dw2 = self.data_weight ** 2

        # ---------------- GMoF slab: diff-x / diff-y / per-lane weight ----------------
        w_joint = joint_weights * joints_conf if self.use_joints_conf else joint_weights
        jd = gt_joints - projected
        dx_parts = [jd[..., 0].reshape(-1)]
        dy_parts = [jd[..., 1].reshape(-1)]
        w_parts = [(w_joint * w_joint).reshape(-1) * dw2]

        if self.boneorientation_loss:
            def bone_diff(p1, p2):
                d = (gt_joints[:, p1, :] - gt_joints[:, p2, :]) \
                    - (projected[:, p1, :] - projected[:, p2, :])
                return d[..., 0].reshape(-1), d[..., 1].reshape(-1)

            bx, by = bone_diff(self.body_p1, self.body_p2)
            dx_parts.append(bx); dy_parts.append(by)
            w_parts.append(jnp.full(bx.shape, dw2, f32))

            # on-device gates replace torch.any host branches
            rh_conf_gate = jnp.any(joints_conf[:, 46:67] > 0).astype(f32)
            rx, ry = bone_diff(self.rhand_p1, self.rhand_p2)
            dx_parts.append(rx); dy_parts.append(ry)
            w_parts.append(jnp.full(rx.shape, dw2, f32) * rh_conf_gate)

            if self.left_handpose_path != 'None':          # static config branch
                lh_conf_gate = jnp.any(joints_conf[:, 25:46] > 0).astype(f32)
                lx, ly = bone_diff(self.lhand_p1, self.lhand_p2)
                dx_parts.append(lx); dy_parts.append(ly)
                w_parts.append(jnp.full(lx.shape, dw2, f32) * lh_conf_gate)

        dx = jnp.concatenate(dx_parts)
        dy = jnp.concatenate(dy_parts)
        wv = jnp.concatenate(w_parts)
        n_gmof = dx.shape[0]
        n_rows = max(1, -(-n_gmof // LANES))               # ceil -> works for any B*J
        gmof_slab = jnp.concatenate([_to_lane_rows(dx, n_rows),
                                     _to_lane_rows(dy, n_rows),
                                     _to_lane_rows(wv, n_rows)], axis=0)

        # ---------------- rot6d slab: curr / prev / per-lane scale ----------------
        curr_parts, prev_parts, scale_parts = [], [], []

        # standing terms (gated on-device: all lower-body confidences == 0)
        standing_gate = jnp.all(joints_conf[:, self.lower_body_joints] == 0).astype(f32)
        n_zero = 45 if self.standing_weight > 50 else 33
        stand_pose = body_pose.at[:, :n_zero].set(0.0)
        sw2 = self.standing_weight ** 2
        curr_parts.append(body_pose.reshape(-1, 3))
        prev_parts.append(stand_pose.reshape(-1, 3))
        scale_parts.append(jnp.full((body_pose.size // 3,), sw2, f32) * standing_gate)

        glob = full_pose[:, 0:3]
        no_rot = glob.at[:, 0].set(np.pi)
        if self.standing_weight > 50:
            no_rot = no_rot.at[:, 1].set(0.0).at[:, 2].set(0.0)
        curr_parts.append(glob.reshape(-1, 3))
        prev_parts.append(no_rot.reshape(-1, 3))
        # PyTorch passes standing_weight**2 into L2Loss, which squares again -> weight**4.
        scale_parts.append(jnp.full((glob.shape[0],), sw2 * sw2, f32) * standing_gate)

        expr_extra = jnp.float32(0.0)
        if self.prev_pose is not None:                     # static: buffers registered
            body_prev = jnp.asarray(self.prev_pose['body'], f32)
            temporal_gate = jnp.any(body_pose > 0).astype(f32)
            btw2 = float(self.body_temp_smooth_weight) ** 2
            curr_parts.append(body_pose.reshape(-1, 3))
            prev_parts.append(body_prev.reshape(-1, 3))
            scale_parts.append(jnp.full((body_pose.size // 3,), btw2, f32) * temporal_gate)

            if self.use_face and not self.expression_precomputed:
                expr_prev = jnp.asarray(self.prev_pose['expression'], f32)
                expr_extra = temporal_gate * jnp.sum(
                    (jnp.asarray(body_model_output['expression'], f32) - expr_prev) ** 2) * 10.0

            if self.use_hands:
                htw2 = float(self.hand_temp_smooth_weight) ** 2
                rh = jnp.asarray(body_model_output['right_hand_pose'], f32)
                rh_prev = jnp.asarray(self.prev_pose['right_hand'], f32)
                rh_gate = temporal_gate * jnp.any(rh > 0).astype(f32)
                curr_parts.append(rh.reshape(-1, 3))
                prev_parts.append(rh_prev.reshape(-1, 3))
                scale_parts.append(jnp.full((rh.size // 3,), htw2, f32) * rh_gate)
                rwrist_gate = rh_gate * (_torch_median(joints_conf[:, 46:67]) == 0.0).astype(f32)
                curr_parts.append(full_pose[:, 63:66].reshape(-1, 3))
                prev_parts.append(body_prev[:, 60:63].reshape(-1, 3))
                scale_parts.append(jnp.full((full_pose.shape[0],), 100.0 ** 2, f32) * rwrist_gate)

                lh = jnp.asarray(body_model_output['left_hand_pose'], f32)
                lh_prev = jnp.asarray(self.prev_pose['left_hand'], f32)
                lh_gate = temporal_gate * jnp.any(lh > 0).astype(f32)
                curr_parts.append(lh.reshape(-1, 3))
                prev_parts.append(lh_prev.reshape(-1, 3))
                scale_parts.append(jnp.full((lh.size // 3,), htw2, f32) * lh_gate)
                lwrist_gate = lh_gate * (_torch_median(joints_conf[:, 25:46]) == 0.0).astype(f32)
                curr_parts.append(full_pose[:, 60:63].reshape(-1, 3))
                prev_parts.append(body_prev[:, 57:60].reshape(-1, 3))
                scale_parts.append(jnp.full((full_pose.shape[0],), 100.0 ** 2, f32) * lwrist_gate)

        curr = jnp.concatenate(curr_parts, axis=0)
        prev = jnp.concatenate(prev_parts, axis=0)
        scale = jnp.concatenate(scale_parts, axis=0)
        L = curr.shape[0]
        assert L <= LANES, (
            f"rot6d slab needs {L} lanes (> {LANES}); the reference PyTorch reshape "
            f"(21,3)/(15,3)/(1,3) assumes batch=1 for these terms.")
        rot_slab = jnp.zeros((8, LANES), f32)
        rot_slab = rot_slab.at[0:3, :L].set(curr.T)
        rot_slab = rot_slab.at[3:6, :L].set(prev.T)
        rot_slab = rot_slab.at[6, :L].set(scale)

        # ---------------- the single fused Pallas kernel call ----------------
        kernel_loss = _fused_loss(gmof_slab, rot_slab, n_rows)

        # ---------------- weight-zero-default prior terms (plain jnp) ----------------
        # TODO(synk): body_pose_prior / angle_prior / shape / hand / face priors and the
        # self-contact module are externally injected nn.Modules; deterministic stand-ins
        # are used and their module-default weights are 0, so they contribute 0 exactly
        # as the PyTorch defaults do.
        pprior_loss = jnp.sum(body_pose ** 2) * self.body_pose_weight ** 2
        angle_idx = np.array([55, 58, 12, 15]) - 3
        angle_sign = jnp.asarray([1.0, -1.0, -1.0, -1.0], f32)
        angle_prior_loss = jnp.sum(jnp.exp(body_pose[:, angle_idx] * angle_sign) ** 2) \
            * self.bending_prior_weight
        shape_loss = jnp.float32(0.0)
        if not self.beta_precomputed:
            shape_loss = jnp.sum(jnp.asarray(body_model_output['betas'], f32) ** 2) \
                * self.shape_weight ** 2
        # hand / expression / jaw priors default to None and interpenetration is
        # disabled -> 0 contribution (matches module defaults).

        return kernel_loss + pprior_loss + angle_prior_loss + shape_loss + expr_extra


# ----------------------------------------------------------------------------
# Example run
# ----------------------------------------------------------------------------
if __name__ == "__main__":
    key = jax.random.PRNGKey(0)
    ks = jax.random.split(key, 12)
    B, J = 1, 67                                   # SMPL-X openpose-style joint count

    joints3d = jax.random.normal(ks[0], (B, J, 3), jnp.float32) * 0.5
    gt_joints = jax.random.normal(ks[1], (B, J, 2), jnp.float32) * 50.0
    joints_conf = jax.random.uniform(ks[2], (B, J), jnp.float32, minval=0.1, maxval=1.0)
    joint_weights = jnp.ones((B, J), jnp.float32)
    full_pose = jax.random.normal(ks[3], (B, 66), jnp.float32) * 0.2
    left_hand_pose = jax.random.normal(ks[4], (B, 45), jnp.float32) * 0.1
    right_hand_pose = jax.random.normal(ks[5], (B, 45), jnp.float32) * 0.1
    betas = jax.random.normal(ks[6], (B, 10), jnp.float32) * 0.1
    expression = jax.random.normal(ks[7], (B, 10), jnp.float32) * 0.1

    prev_pose = {
        'body': jax.random.normal(ks[8], (B, 63), jnp.float32) * 0.2,
        'expression': jax.random.normal(ks[9], (B, 10), jnp.float32) * 0.1,
        'left_hand': jax.random.normal(ks[10], (B, 45), jnp.float32) * 0.1,
        'right_hand': jax.random.normal(ks[11], (B, 45), jnp.float32) * 0.1,
    }

    body_model_output = {
        'joints': joints3d,
        'full_pose': full_pose,
        'body_pose': full_pose[:, 3:66],
        'betas': betas,
        'expression': expression,
        'left_hand_pose': left_hand_pose,
        'right_hand_pose': right_hand_pose,
    }

    # TODO(synk): the original camera is an external nn.Module; a deterministic
    # pinhole projection stands in for it here.
    def camera(joints):
        j = joints + jnp.asarray([0.0, 0.0, 5.0], jnp.float32)
        return 500.0 * j[..., :2] / j[..., 2:3]

    loss_mod = TemporalSMPLifyLossPallas(
        loss_type='sgnify',
        prev_pose=prev_pose,
        body_boneorientation_pairs=["1,2", "2,3", "3,4", "1,5", "5,6", "6,7", "1,8"],
        hand_boneorientation_pairs=["0,1", "1,2", "2,3", "3,4", "0,5", "5,6", "6,7"],
        boneorientation_loss=True,
        body_temp_smooth_weight=1.0,
        hand_temp_smooth_weight=1.0,
        data_weight=1.0,
    )

    # Forward is now free of host syncs -> fully jittable.
    @jax.jit
    def forward(bmo, gt_j, jc, jw):
        return loss_mod(bmo, camera, gt_j, jc, None, jw)

    total_loss = forward(body_model_output, gt_joints, joints_conf, joint_weights)
    total_loss = jax.block_until_ready(total_loss)
    assert jnp.isfinite(total_loss), total_loss
    print("KERNEL_OK")
</pallas_src>

<mosaic_0001>
module attributes {stable_mosaic.version = 11 : i64} {
  func.func @_fused_loss_kernel(%arg0: memref<3x128xf32, #tpu.memory_space<vmem>>, %arg1: memref<8x128xf32, #tpu.memory_space<vmem>>, %arg2: memref<1x1xf32, #tpu.memory_space<smem>>) attributes {dimension_semantics = [], scalar_prefetch = 0 : i64, scratch_operands = 0 : i64, tpu.core_type = #tpu.core_type<tc>} {
    %c0 = arith.constant 0 : index
    %c0_0 = arith.constant 0 : index
    %0 = vector.load %arg0[%c0, %c0_0] : memref<3x128xf32, #tpu.memory_space<vmem>>, vector<3x128xf32>
    %1 = vector.extract_strided_slice %0 {offsets = [0, 0], sizes = [1, 128], strides = [1, 1]} : vector<3x128xf32> to vector<1x128xf32>
    %2 = vector.extract_strided_slice %0 {offsets = [1, 0], sizes = [1, 128], strides = [1, 1]} : vector<3x128xf32> to vector<1x128xf32>
    %3 = vector.extract_strided_slice %0 {offsets = [2, 0], sizes = [1, 128], strides = [1, 1]} : vector<3x128xf32> to vector<1x128xf32>
    %4 = arith.mulf %1, %1 : vector<1x128xf32>
    %5 = arith.mulf %2, %2 : vector<1x128xf32>
    %cst = arith.constant 1.000000e+04 : f32
    %6 = vector.broadcast %cst : f32 to vector<1x128xf32>
    %7 = arith.addf %4, %6 : vector<1x128xf32>
    %8 = tpu.reciprocal %7 {approx = true} : vector<1x128xf32> -> vector<1x128xf32>
    %9 = arith.mulf %4, %8 : vector<1x128xf32>
    %cst_1 = arith.constant 1.000000e+04 : f32
    %10 = vector.broadcast %cst_1 : f32 to vector<1x128xf32>
    %11 = arith.addf %5, %10 : vector<1x128xf32>
    %12 = tpu.reciprocal %11 {approx = true} : vector<1x128xf32> -> vector<1x128xf32>
    %13 = arith.mulf %5, %12 : vector<1x128xf32>
    %14 = arith.addf %9, %13 : vector<1x128xf32>
    %cst_2 = arith.constant 1.000000e+04 : f32
    %15 = vector.broadcast %cst_2 : f32 to vector<1x128xf32>
    %16 = arith.mulf %15, %14 : vector<1x128xf32>
    %17 = arith.mulf %3, %16 : vector<1x128xf32>
    %18 = vector.shape_cast %17 : vector<1x128xf32> to vector<1x1x128xf32>
    %cst_3 = arith.constant dense<0.000000e+00> : vector<1xf32>
    %19 = vector.multi_reduction <add>, %18, %cst_3 [1, 2] : vector<1x1x128xf32> to vector<1xf32>
    %20 = vector.shape_cast %19 : vector<1xf32> to vector<1x1x1xf32>
    %21 = vector.extract %20[0, 0, 0] : f32 from vector<1x1x1xf32>
    %c0_4 = arith.constant 0 : index
    %c0_5 = arith.constant 0 : index
    %22 = vector.load %arg1[%c0_4, %c0_5] : memref<8x128xf32, #tpu.memory_space<vmem>>, vector<8x128xf32>
    %23 = vector.extract_strided_slice %22 {offsets = [0, 0], sizes = [3, 128], strides = [1, 1]} : vector<8x128xf32> to vector<3x128xf32>
    %24 = vector.extract_strided_slice %23 {offsets = [0, 0], sizes = [1, 128], strides = [1, 1]} : vector<3x128xf32> to vector<1x128xf32>
    %25 = vector.extract_strided_slice %23 {offsets = [1, 0], sizes = [1, 128], strides = [1, 1]} : vector<3x128xf32> to vector<1x128xf32>
    %26 = vector.extract_strided_slice %23 {offsets = [2, 0], sizes = [1, 128], strides = [1, 1]} : vector<3x128xf32> to vector<1x128xf32>
    %27 = arith.mulf %24, %24 : vector<1x128xf32>
    %28 = arith.mulf %25, %25 : vector<1x128xf32>
    %29 = arith.addf %27, %28 : vector<1x128xf32>
    %30 = arith.mulf %26, %26 : vector<1x128xf32>
    %31 = arith.addf %29, %30 : vector<1x128xf32>
    %32 = math.sqrt %31 : vector<1x128xf32>
    %cst_6 = arith.constant 5.000000e-01 : f32
    %33 = vector.broadcast %cst_6 : f32 to vector<1x128xf32>
    %34 = arith.mulf %33, %32 : vector<1x128xf32>
    %cst_7 = arith.constant 9.99999997E-7 : f32
    %35 = vector.broadcast %cst_7 : f32 to vector<1x128xf32>
    %36 = arith.cmpf olt, %32, %35 : vector<1x128xf32>
    %cst_8 = arith.constant 1.000000e+00 : f32
    %37 = vector.broadcast %cst_8 : f32 to vector<1x128xf32>
    %38 = arith.select %36, %37, %32 : vector<1x128xi1>, vector<1x128xf32>
    %39 = arith.mulf %32, %32 : vector<1x128xf32>
    %cst_9 = arith.constant 4.800000e+01 : f32
    %40 = vector.broadcast %cst_9 : f32 to vector<1x128xf32>
    %41 = arith.divf %39, %40 : vector<1x128xf32>
    %cst_10 = arith.constant 5.000000e-01 : f32
    %42 = vector.broadcast %cst_10 : f32 to vector<1x128xf32>
    %43 = arith.subf %42, %41 : vector<1x128xf32>
    %44 = math.sin %34 : vector<1x128xf32>
    %45 = tpu.reciprocal %38 {approx = true} : vector<1x128xf32> -> vector<1x128xf32>
    %46 = arith.mulf %44, %45 : vector<1x128xf32>
    %47 = arith.select %36, %43, %46 : vector<1x128xi1>, vector<1x128xf32>
    %48 = math.cos %34 : vector<1x128xf32>
    %49 = arith.mulf %24, %47 : vector<1x128xf32>
    %50 = arith.mulf %25, %47 : vector<1x128xf32>
    %51 = arith.mulf %26, %47 : vector<1x128xf32>
    %52 = arith.mulf %48, %48 : vector<1x128xf32>
    %53 = arith.mulf %49, %49 : vector<1x128xf32>
    %54 = arith.addf %52, %53 : vector<1x128xf32>
    %55 = arith.mulf %50, %50 : vector<1x128xf32>
    %56 = arith.addf %54, %55 : vector<1x128xf32>
    %57 = arith.mulf %51, %51 : vector<1x128xf32>
    %58 = arith.addf %56, %57 : vector<1x128xf32>
    %59 = tpu.reciprocal %58 {approx = true} : vector<1x128xf32> -> vector<1x128xf32>
    %cst_11 = arith.constant 2.000000e+00 : f32
    %60 = vector.broadcast %cst_11 : f32 to vector<1x128xf32>
    %61 = arith.mulf %60, %59 : vector<1x128xf32>
    %62 = arith.mulf %50, %50 : vector<1x128xf32>
    %63 = arith.mulf %51, %51 : vector<1x128xf32>
    %64 = arith.addf %62, %63 : vector<1x128xf32>
    %65 = arith.mulf %61, %64 : vector<1x128xf32>
    %cst_12 = arith.constant 1.000000e+00 : f32
    %66 = vector.broadcast %cst_12 : f32 to vector<1x128xf32>
    %67 = arith.subf %66, %65 : vector<1x128xf32>
    %68 = arith.mulf %49, %50 : vector<1x128xf32>
    %69 = arith.mulf %51, %48 : vector<1x128xf32>
    %70 = arith.subf %68, %69 : vector<1x128xf32>
    %71 = arith.mulf %61, %70 : vector<1x128xf32>
    %72 = arith.mulf %49, %51 : vector<1x128xf32>
    %73 = arith.mulf %50, %48 : vector<1x128xf32>
    %74 = arith.addf %72, %73 : vector<1x128xf32>
    %75 = arith.mulf %61, %74 : vector<1x128xf32>
    %76 = arith.mulf %49, %50 : vector<1x128xf32>
    %77 = arith.mulf %51, %48 : vector<1x128xf32>
    %78 = arith.addf %76, %77 : vector<1x128xf32>
    %79 = arith.mulf %61, %78 : vector<1x128xf32>
    %80 = arith.mulf %49, %49 : vector<1x128xf32>
    %81 = arith.mulf %51, %51 : vector<1x128xf32>
    %82 = arith.addf %80, %81 : vector<1x128xf32>
    %83 = arith.mulf %61, %82 : vector<1x128xf32>
    %cst_13 = arith.constant 1.000000e+00 : f32
    %84 = vector.broadcast %cst_13 : f32 to vector<1x128xf32>
    %85 = arith.subf %84, %83 : vector<1x128xf32>
    %86 = arith.mulf %50, %51 : vector<1x128xf32>
    %87 = arith.mulf %49, %48 : vector<1x128xf32>
    %88 = arith.subf %86, %87 : vector<1x128xf32>
    %89 = arith.mulf %61, %88 : vector<1x128xf32>
    %90 = vector.extract_strided_slice %22 {offsets = [3, 0], sizes = [3, 128], strides = [1, 1]} : vector<8x128xf32> to vector<3x128xf32>
    %91 = vector.extract_strided_slice %90 {offsets = [0, 0], sizes = [1, 128], strides = [1, 1]} : vector<3x128xf32> to vector<1x128xf32>
    %92 = vector.extract_strided_slice %90 {offsets = [1, 0], sizes = [1, 128], strides = [1, 1]} : vector<3x128xf32> to vector<1x128xf32>
    %93 = vector.extract_strided_slice %90 {offsets = [2, 0], sizes = [1, 128], strides = [1, 1]} : vector<3x128xf32> to vector<1x128xf32>
    %94 = arith.mulf %91, %91 : vector<1x128xf32>
    %95 = arith.mulf %92, %92 : vector<1x128xf32>
    %96 = arith.addf %94, %95 : vector<1x128xf32>
    %97 = arith.mulf %93, %93 : vector<1x128xf32>
    %98 = arith.addf %96, %97 : vector<1x128xf32>
    %99 = math.sqrt %98 : vector<1x128xf32>
    %cst_14 = arith.constant 5.000000e-01 : f32
    %100 = vector.broadcast %cst_14 : f32 to vector<1x128xf32>
    %101 = arith.mulf %100, %99 : vector<1x128xf32>
    %cst_15 = arith.constant 9.99999997E-7 : f32
    %102 = vector.broadcast %cst_15 : f32 to vector<1x128xf32>
    %103 = arith.cmpf olt, %99, %102 : vector<1x128xf32>
    %cst_16 = arith.constant 1.000000e+00 : f32
    %104 = vector.broadcast %cst_16 : f32 to vector<1x128xf32>
    %105 = arith.select %103, %104, %99 : vector<1x128xi1>, vector<1x128xf32>
    %106 = arith.mulf %99, %99 : vector<1x128xf32>
    %cst_17 = arith.constant 4.800000e+01 : f32
    %107 = vector.broadcast %cst_17 : f32 to vector<1x128xf32>
    %108 = arith.divf %106, %107 : vector<1x128xf32>
    %cst_18 = arith.constant 5.000000e-01 : f32
    %109 = vector.broadcast %cst_18 : f32 to vector<1x128xf32>
    %110 = arith.subf %109, %108 : vector<1x128xf32>
    %111 = math.sin %101 : vector<1x128xf32>
    %112 = tpu.reciprocal %105 {approx = true} : vector<1x128xf32> -> vector<1x128xf32>
    %113 = arith.mulf %111, %112 : vector<1x128xf32>
    %114 = arith.select %103, %110, %113 : vector<1x128xi1>, vector<1x128xf32>
    %115 = math.cos %101 : vector<1x128xf32>
    %116 = arith.mulf %91, %114 : vector<1x128xf32>
    %117 = arith.mulf %92, %114 : vector<1x128xf32>
    %118 = arith.mulf %93, %114 : vector<1x128xf32>
    %119 = arith.mulf %115, %115 : vector<1x128xf32>
    %120 = arith.mulf %116, %116 : vector<1x128xf32>
    %121 = arith.addf %119, %120 : vector<1x128xf32>
    %122 = arith.mulf %117, %117 : vector<1x128xf32>
    %123 = arith.addf %121, %122 : vector<1x128xf32>
    %124 = arith.mulf %118, %118 : vector<1x128xf32>
    %125 = arith.addf %123, %124 : vector<1x128xf32>
    %126 = tpu.reciprocal %125 {approx = true} : vector<1x128xf32> -> vector<1x128xf32>
    %cst_19 = arith.constant 2.000000e+00 : f32
    %127 = vector.broadcast %cst_19 : f32 to vector<1x128xf32>
    %128 = arith.mulf %127, %126 : vector<1x128xf32>
    %129 = arith.mulf %117, %117 : vector<1x128xf32>
    %130 = arith.mulf %118, %118 : vector<1x128xf32>
    %131 = arith.addf %129, %130 : vector<1x128xf32>
    %132 = arith.mulf %128, %131 : vector<1x128xf32>
    %cst_20 = arith.constant 1.000000e+00 : f32
    %133 = vector.broadcast %cst_20 : f32 to vector<1x128xf32>
    %134 = arith.subf %133, %132 : vector<1x128xf32>
    %135 = arith.mulf %116, %117 : vector<1x128xf32>
    %136 = arith.mulf %118, %115 : vector<1x128xf32>
    %137 = arith.subf %135, %136 : vector<1x128xf32>
    %138 = arith.mulf %128, %137 : vector<1x128xf32>
    %139 = arith.mulf %116, %118 : vector<1x128xf32>
    %140 = arith.mulf %117, %115 : vector<1x128xf32>
    %141 = arith.addf %139, %140 : vector<1x128xf32>
    %142 = arith.mulf %128, %141 : vector<1x128xf32>
    %143 = arith.mulf %116, %117 : vector<1x128xf32>
    %144 = arith.mulf %118, %115 : vector<1x128xf32>
    %145 = arith.addf %143, %144 : vector<1x128xf32>
    %146 = arith.mulf %128, %145 : vector<1x128xf32>
    %147 = arith.mulf %116, %116 : vector<1x128xf32>
    %148 = arith.mulf %118, %118 : vector<1x128xf32>
    %149 = arith.addf %147, %148 : vector<1x128xf32>
    %150 = arith.mulf %128, %149 : vector<1x128xf32>
    %cst_21 = arith.constant 1.000000e+00 : f32
    %151 = vector.broadcast %cst_21 : f32 to vector<1x128xf32>
    %152 = arith.subf %151, %150 : vector<1x128xf32>
    %153 = arith.mulf %117, %118 : vector<1x128xf32>
    %154 = arith.mulf %116, %115 : vector<1x128xf32>
    %155 = arith.subf %153, %154 : vector<1x128xf32>
    %156 = arith.mulf %128, %155 : vector<1x128xf32>
    %157 = vector.extract_strided_slice %22 {offsets = [6, 0], sizes = [1, 128], strides = [1, 1]} : vector<8x128xf32> to vector<1x128xf32>
    %cst_22 = arith.constant 0.000000e+00 : f32
    %158 = vector.broadcast %cst_22 : f32 to vector<1x128xf32>
    %159 = arith.subf %67, %134 : vector<1x128xf32>
    %160 = arith.mulf %159, %159 : vector<1x128xf32>
    %161 = arith.addf %158, %160 : vector<1x128xf32>
    %162 = arith.subf %71, %138 : vector<1x128xf32>
    %163 = arith.mulf %162, %162 : vector<1x128xf32>
    %164 = arith.addf %161, %163 : vector<1x128xf32>
    %165 = arith.subf %75, %142 : vector<1x128xf32>
    %166 = arith.mulf %165, %165 : vector<1x128xf32>
    %167 = arith.addf %164, %166 : vector<1x128xf32>
    %168 = arith.subf %79, %146 : vector<1x128xf32>
    %169 = arith.mulf %168, %168 : vector<1x128xf32>
    %170 = arith.addf %167, %169 : vector<1x128xf32>
    %171 = arith.subf %85, %152 : vector<1x128xf32>
    %172 = arith.mulf %171, %171 : vector<1x128xf32>
    %173 = arith.addf %170, %172 : vector<1x128xf32>
    %174 = arith.subf %89, %156 : vector<1x128xf32>
    %175 = arith.mulf %174, %174 : vector<1x128xf32>
    %176 = arith.addf %173, %175 : vector<1x128xf32>
    %177 = arith.mulf %157, %176 : vector<1x128xf32>
    %178 = vector.shape_cast %177 : vector<1x128xf32> to vector<1x1x128xf32>
    %cst_23 = arith.constant dense<0.000000e+00> : vector<1xf32>
    %179 = vector.multi_reduction <add>, %178, %cst_23 [1, 2] : vector<1x1x128xf32> to vector<1xf32>
    %180 = vector.shape_cast %179 : vector<1xf32> to vector<1x1x1xf32>
    %181 = vector.extract %180[0, 0, 0] : f32 from vector<1x1x1xf32>
    %182 = arith.addf %21, %181 : f32
    %c0_24 = arith.constant 0 : index
    %c0_25 = arith.constant 0 : index
    %183 = memref.load %arg2[%c0_24, %c0_25] : memref<1x1xf32, #tpu.memory_space<smem>>
    memref.store %182, %arg2[%c0_24, %c0_25] : memref<1x1xf32, #tpu.memory_space<smem>>
    return
  }
}

</mosaic_0001>

<bundles_post_ra>
// kernel: mul.26
= control target key start
LH: loop header
LB: loop body
LE: loop exit
PB: predicated region body
PF: predicated region fallthrough
CT: control target
= control target key end

     0   :  { %s20_s0 = inlined_call_operand.<no memory space> [shape: f32[], index: 0, kind: input, shape index: {}]   ;;  %s21_s1 = inlined_call_operand.vmem [shape: f32[21], index: 1, kind: output, shape index: {}]  }
   0x1   :  { %v2_v0 = vstv %s20_s0 }
   0x2   :  { %3 = vst [vmem:[%s21_s1] sm:$0x1] %v2_v0 }

// kernel: mul.23
= control target key start
LH: loop header
LB: loop body
LE: loop exit
PB: predicated region body
PF: predicated region fallthrough
CT: control target
= control target key end

     0   :  { %s20_s0 = inlined_call_operand.<no memory space> [shape: f32[], index: 0, kind: input, shape index: {}]   ;;  %s21_s1 = inlined_call_operand.vmem [shape: f32[7], index: 1, kind: output, shape index: {}]  }
   0x1   :  { %v2_v0 = vstv %s20_s0 }
   0x2   :  { %3 = vst [vmem:[%s21_s1] sm:$0x1] %v2_v0 }

// kernel: mul.32
= control target key start
LH: loop header
LB: loop body
LE: loop exit
PB: predicated region body
PF: predicated region fallthrough
CT: control target
= control target key end

     0   :  { %s20_s0 = inlined_call_operand.<no memory space> [shape: f32[], index: 0, kind: input, shape index: {}]   ;;  %s21_s1 = inlined_call_operand.vmem [shape: f32[15], index: 1, kind: output, shape index: {}]  }
   0x1   :  { %v2_v0 = vstv %s20_s0 }
   0x2   :  { %3 = vst [vmem:[%s21_s1] sm:$0x1] %v2_v0 }

// kernel: mul.19
= control target key start
LH: loop header
LB: loop body
LE: loop exit
PB: predicated region body
PF: predicated region fallthrough
CT: control target
= control target key end

     0   :  { %s20_s0 = inlined_call_operand.<no memory space> [shape: f32[], index: 0, kind: input, shape index: {}]   ;;  %s21_s1 = inlined_call_operand.vmem [shape: f32[1,67,2], index: 1, kind: output, shape index: {}]  }
   0x1   :  { %v2_v0 = vstv %s20_s0 }
   0x2   :  { %3 = vst [vmem:[%s21_s1] sm:$0x3] %v2_v0 }

// kernel: forward.1
= control target key start
LH: loop header
LB: loop body
LE: loop exit
PB: predicated region body
PF: predicated region fallthrough
CT: control target
= control target key end

     0   :  { %s544_s0 = inlined_call_operand.vmem [shape: f32[3,128], index: 0, kind: input, shape index: {}]   ;;  %s545_s1 = inlined_call_operand.vmem [shape: f32[8,128], index: 1, kind: input, shape index: {}]   ;;  %s546_s2 = inlined_call_operand.hbm [shape: f32[1,1], index: 2, kind: output, shape index: {}]  }
   0x1   :  { %v12_v0 = vld [vmem:[%s544_s0] sm:$0x7] }
   0x2   :  { %v490_v1 = vld [vmem:[%s545_s1] sm:$0xff]  ;;  %v13_v2 = vmul.f32 %v12_v0, %v12_v0 }
   0x3   :  { %v41_v3 = vmul.f32 %v490_v1, %v490_v1 }
   0x4   :  { %7 = vsyncpa [#allocation3], 0  ;;  %v14_v4 = vadd.f32 10000.0, %v13_v2  ;;  %vm29_vm2 = vcmask 1040384   ;;  %v462_v35 = vmov 683565275  }
   0x5   :  { %v43_v5 = vrot.slane %v41_v3, 1  ;;  %v46_v6 = vrot.slane %v41_v3, 2  ;;  %v463_v37 = vmov 2475754826   ;;  %v464_v39 = vmov 2131351028  }
   0x6   :  { %438 = vrcp.f32 %v14_v4  ;;  %v465_v41 = vmov 2102212464   ;;  %v466_v43 = vmov 920167782   ;;  %v467_v50 = vmov 1326507024  }
   0x7   :  { %v45_v7 = vadd.f32 %v43_v5, %v41_v3  ;;  %s450_s16 = scalar_lea.hbm %s546_s2, 16 }
   0x8   :  { %p451_p0 = scmp.ne.s32.totalorder %s546_s2, %s450_s16  ;;  %p454_p1 = scmp.lt.u32.totalorder %s450_s16, %s546_s2 }
   0x9   :  { %v48_v8 = vadd.f32 %v46_v6, %v45_v7 }
   0xa   :  { %p456_p2 = pnand %p454_p1, %p451_p0 }
   0xb   :  { %440 = vrsqrt.f32 %v48_v8  ;;  %vm51_vm0 = vcmp.eq.f32.partialorder %v48_v8, inf  ;;  %v54_v13 = vand.u32 2147483648, %v48_v8  ;;  %vm53_vm1 = vcmp.eq.f32.partialorder %v48_v8, 0.0 }
  0x10   :  { %v439_v9 = vpop.eup %438 }
  0x11   :  { %v16_v10 = vmul.f32 %v439_v9, %v13_v2 }
  0x13   :  { %v18_v11 = vrot.slane %v16_v10, 1 }
  0x15   :  { %v441_v12 = vpop.eup %440  ;;  %v20_v14 = vadd.f32 %v18_v11, %v16_v10 }
  0x16   :  { %v50_v15 = vmul.f32 %v441_v12, %v48_v8 }
  0x17   :  { %v21_v16 = vmul.f32 10000.0, %v20_v14 }
  0x18   :  { %v52_v17 = vsel %vm51_vm0, %v48_v8, %v50_v15 }
  0x19   :  { %v494_v18 = vsel %vm53_vm1, %v54_v13, %v52_v17  ;;  %v23_v19 = vrot.slane %v21_v16, 6 }
  0x1a   :  { %v497_v20 = vmul.f32 0.5, %v494_v18  ;;  %vm57_vm12 = vcmp.lt.f32.partialorder %v494_v18, 1e-06 }
  0x1b   :  { %v25_v21 = vmul.f32 %v23_v19, %v12_v0 }
  0x1c   :  { %v66_v22 = vand.u32 2139095040, %v497_v20  ;;  %v63_v26 = vand.u32 2147483647, %v497_v20  ;;  %vm65_vm10 = vcmp.lt.s32.totalorder %v497_v20, 0 }
  0x1d   :  { %v27_v23 = vrot.slane %v25_v21, 2 }
  0x1e   :  { %v67_v24 = vshrl.u32 %v66_v22, 23  ;;  %v70_v29 = vand.u32 8388607, %v63_v26  ;;  %vm64_vm11 = vcmp.le.f32.partialorder %v63_v26, 0.7853982  ;;  %v59_v26 = vmul.f32 %v494_v18, %v494_v18 }
  0x1f   :  { %v30_v25 = vsel %vm29_vm2, %v27_v23, 0.0 }
  0x20   :  { %31 = vadd.xlane.f32.xlu0 %v30_v25  ;;  %v415_v27 = vadd.s32 4294967169, %v67_v24  ;;  %v71_v32 = vor.u32 8388608, %v70_v29 }
  0x22   :  { %v73_v28 = vadd.s32 1, %v415_v27  ;;  %v111_v52 = vshll.u32 %v71_v32, 8 }
  0x24   :  { %vm74_vm3 = vcmp.gt.s32.totalorder %v73_v28, 0 }
  0x25   :  { %v75_v30 = vsel %vm74_vm3, %v73_v28, 0 }
  0x26   :  { %v77_v31 = vand.u32 31, %v75_v30  ;;  %v76_v33 = vshrl.u32 %v75_v30, 5 }
  0x28   :  { %v78_v34 = vsub.s32 32, %v77_v31  ;;  %v80_v36 = vshll.u32 %v462_v35, %v77_v31  ;;  %v83_v38 = vshll.u32 %v463_v37, %v77_v31  ;;  %v86_v40 = vshll.u32 %v464_v39, %v77_v31 }
  0x29   :  { %v89_v42 = vshll.u32 %v465_v41, %v77_v31  ;;  %v92_v44 = vshll.u32 %v466_v43, %v77_v31  ;;  %vm95_vm4 = vcmp.lt.s32.totalorder %v76_v33, 1  ;;  %vm98_vm5 = vcmp.lt.s32.totalorder %v76_v33, 4 }
  0x2a   :  { %v79_v45 = vshrl.u32 %v462_v35, %v78_v34  ;;  %v81_v46 = vshrl.u32 %v463_v37, %v78_v34  ;;  %v84_v47 = vshrl.u32 %v464_v39, %v78_v34  ;;  %v87_v48 = vshrl.u32 %v465_v41, %v78_v34 }
  0x2b   :  { %v90_v49 = vshrl.u32 %v466_v43, %v78_v34  ;;  %v93_v51 = vshrl.u32 %v467_v50, %v78_v34  ;;  %vm96_vm6 = vcmp.lt.s32.totalorder %v76_v33, 2  ;;  %vm97_vm7 = vcmp.lt.s32.totalorder %v76_v33, 3 }
  0x2c   :  { %v82_v53 = vor.u32 %v81_v46, %v80_v36  ;;  %v85_v54 = vor.u32 %v84_v47, %v83_v38  ;;  %v88_v55 = vor.u32 %v87_v48, %v86_v40 }
  0x2d   :  { %v91_v56 = vor.u32 %v90_v49, %v89_v42  ;;  %v94_v57 = vor.u32 %v93_v51, %v92_v44  ;;  %v61_v51 = vmul.f32 0.020833334, %v59_v26 }
  0x2e   :  { %v99_v58 = vsel %vm95_vm4, %v79_v45, %v82_v53  ;;  %v100_v59 = vsel %vm98_vm5, %v88_v55, 2102212464  ;;  %v103_v60 = vsel %vm95_vm4, %v82_v53, %v85_v54  ;;  %v107_v61 = vsel %vm95_vm4, %v85_v54, %v88_v55 }
  0x2f   :  { %v101_v62 = vsel %vm97_vm7, %v85_v54, %v100_v59  ;;  %v104_v63 = vsel %vm98_vm5, %v91_v56, 920167782  ;;  %v108_v0 = vsel %vm98_vm5, %v94_v57, 1326507024  ;;  %v58_v45 = vsel %vm57_vm12, 1.0, %v494_v18 }
  0x30   :  { %v105_v2 = vsel %vm97_vm7, %v88_v55, %v104_v63  ;;  %v109_v3 = vsel %vm97_vm7, %v91_v56, %v108_v0  ;;  %v102_v4 = vsel %vm96_vm6, %v99_v58, %v101_v62  ;;  %vm155_vm4 = vweird.f32 %v497_v20 }
  0x31   :  { %v106_v5 = vsel %vm96_vm6, %v103_v60, %v105_v2  ;;  %v110_v6 = vsel %vm96_vm6, %v107_v61, %v109_v3  ;;  %v118_v11 = vmul.u32 %v111_v52, %v102_v4  ;;  %v62_v59 = vsub.f32 0.5, %v61_v51 }
  0x32   :  { %v504_v7 = vmul.u32.u64.low %v111_v52, %v110_v6  ;;  %v505_v8 = vmul.u32.u64.high %v111_v52, %v110_v6, %v504_v7  ;;  %v507_v9 = vmul.u32.u64.low %v111_v52, %v106_v5  ;;  %v508_v10 = vmul.u32.u64.high %v111_v52, %v106_v5, %v507_v9 }
  0x34   :  { %vm120_vm8 = vc.u32 %v505_v8, %v507_v9  ;;  %v121_v12 = vadd.s32 1, %v508_v10  ;;  %v119_v25 = vadd.s32 %v507_v9, %v505_v8 }
  0x36   :  { %v122_v13 = vsel %vm120_vm8, %v121_v12, %v508_v10 }
  0x37   :  { %v123_v14 = vadd.s32 %v122_v13, %v118_v11 }
  0x39   :  { %v124_v15 = vadd.s32 536870912, %v123_v14 }
  0x3b   :  { %v125_v16 = vshrl.u32 %v124_v15, 30 }
  0x3d   :  { %v126_v17 = vshll.u32 %v125_v16, 30  ;;  %v149_v38 = vsub.s32 4, %v125_v16 }
  0x3f   :  { %v127_v19 = vsub.s32 %v123_v14, %v126_v17  ;;  %v150_v41 = vsel %vm65_vm10, %v149_v38, %v125_v16 }
  0x40   :  { %v152_v44 = vsel %vm64_vm11, 0, %v150_v41 }
  0x41   :  { %v129_v21 = vsub.s32 0, %v127_v19  ;;  %v156_v46 = vadd.s32 3, %v152_v44  ;;  %v263_v48 = vand.u32 3, %v152_v44 }
  0x43   :  { %v416_v22 = vmin.u32 %v129_v21, %v127_v19  ;;  %v157_v47 = vand.u32 3, %v156_v46  ;;  %vm268_vm14 = vcmp.eq.s32.totalorder %v263_v48, 2  ;;  %vm265_vm0 = vcmp.eq.s32.totalorder %v263_v48, 0 }
  0x44   :  { %vm264_vm3 = vcmp.lt.s32.totalorder %v263_v48, 2 }
  0x45   :  { %v131_v23 = vclz %v416_v22  ;;  %vm162_vm13 = vcmp.eq.s32.totalorder %v157_v47, 2  ;;  %vm159_vm15 = vcmp.eq.s32.totalorder %v157_v47, 0  ;;  %vm158_vm1 = vcmp.lt.s32.totalorder %v157_v47, 2 }
  0x47   :  { %v417_v24 = vadd.s32 4294967294, %v131_v23 }
  0x49   :  { %vm418_vm9 = vcmp.lt.s32.totalorder %v417_v24, 0 }
  0x4a   :  { %v134_v27 = vsel %vm418_vm9, 0, %v417_v24 }
  0x4b   :  { %v135_v28 = vsub.s32 32, %v134_v27  ;;  %v136_v29 = vshll.u32 %v127_v19, %v134_v27  ;;  %v139_v30 = vsub.s32 4294967266, %v134_v27 }
  0x4d   :  { %v137_v31 = vshrl.u32 %v119_v25, %v135_v28  ;;  %v140_v32 = vadd.s32 127, %v139_v30 }
  0x4f   :  { %v138_v33 = vor.u32 %v137_v31, %v136_v29  ;;  %v141_v34 = vshll.u32 %v140_v32, 23 }
  0x51   :  { %v142_v35 = vor.u32 4788187, %v141_v34  ;;  %v145_v36 = vcvt.s32.f32 %v138_v33 }
  0x53   :  { %v143_v37 = vand.u32 2147483647, %v142_v35 }
  0x55   :  { %v146_v39 = vmul.f32 %v145_v36, %v143_v37 }
  0x57   :  { %v147_v40 = vxor.u32 2147483648, %v146_v39 }
  0x59   :  { %v148_v42 = vsel %vm65_vm10, %v147_v40, %v146_v39 }
  0x5a   :  { %v151_v43 = vsel %vm64_vm11, %v497_v20, %v148_v42 }
  0x5b   :  { %442 = vcosq.f32 %v151_v43 }
  0x5c   :  { %444 = vsinq.f32 %v151_v43 }
  0x5d   :  { %446 = vrcp.f32 %v58_v45 }
  0x65   :  { %v443_v49 = vpop.eup %442 }
  0x66   :  { %v445_v50 = vpop.eup %444  ;;  %v163_v52 = vxor.u32 2147483648, %v443_v49 }
  0x67   :  { %v160_v53 = vxor.u32 2147483648, %v445_v50  ;;  %v447_v56 = vpop.eup %446 }
  0x68   :  { %v164_v54 = vsel %vm162_vm13, %v163_v52, %v445_v50  ;;  %v270_v55 = vsel %vm268_vm14, %v163_v52, %v445_v50 }
  0x69   :  { %v161_v57 = vsel %vm159_vm15, %v443_v49, %v160_v53  ;;  %v267_v58 = vsel %vm265_vm0, %v443_v49, %v160_v53 }
  0x6a   :  { %v165_v60 = vsel %vm158_vm1, %v161_v57, %v164_v54  ;;  %v271_v61 = vsel %vm264_vm3, %v267_v58, %v270_v55 }
  0x6b   :  { %v166_v62 = vsel %vm155_vm4, nan, %v165_v60  ;;  %v272_v0 = vsel %vm155_vm4, nan, %v271_v61 }
  0x6c   :  { %v168_v63 = vmul.f32 %v447_v56, %v166_v62  ;;  %v281_v6 = vmul.f32 %v272_v0, %v272_v0  ;;  %v309_v15 = vrot.slane %v272_v0, 6  ;;  %v321_v16 = vrot.slane %v272_v0, 7 }
  0x6e   :  { %v169_v2 = vsel %vm57_vm12, %v62_v59, %v168_v63 }
  0x6f   :  { %v273_v3 = vmul.f32 %v169_v2, %v490_v1  ;;  %v275_v4 = vrot.slane %v169_v2, 7  ;;  %v278_v5 = vrot.slane %v169_v2, 6 }
  0x71   :  { %v277_v20 = vmul.f32 %v275_v4, %v490_v1  ;;  %v280_v7 = vmul.f32 %v278_v5, %v490_v1  ;;  %v282_v8 = vmul.f32 %v273_v3, %v273_v3  ;;  %v337_v19 = vmul.f32 %v273_v3, %v272_v0 }
  0x73   :  { %v283_v9 = vadd.f32 %v282_v8, %v281_v6  ;;  %v284_v10 = vmul.f32 %v277_v20, %v277_v20  ;;  %v289_v11 = vmul.f32 %v280_v7, %v280_v7  ;;  %v334_v17 = vrot.slane %v280_v7, 1 }
  0x74   :  { %v305_v21 = vrot.slane %v277_v20, 1  ;;  %v311_v23 = vmul.f32 %v309_v15, %v280_v7  ;;  %v318_v24 = vrot.slane %v280_v7, 2  ;;  %v323_v25 = vmul.f32 %v321_v16, %v277_v20 }
  0x75   :  { %v286_v12 = vrot.slane %v284_v10, 1  ;;  %v291_v13 = vrot.slane %v289_v11, 2  ;;  %v296_v22 = vrot.slane %v289_v11, 1  ;;  %v336_v27 = vmul.f32 %v334_v17, %v277_v20 }
  0x76   :  { %v339_v28 = vrot.slane %v337_v19, 7  ;;  %v307_v29 = vmul.f32 %v305_v21, %v273_v3  ;;  %v313_v31 = vrot.slane %v311_v23, 2  ;;  %v320_v32 = vmul.f32 %v318_v24, %v273_v3 }
  0x77   :  { %v288_v14 = vadd.f32 %v286_v12, %v283_v9  ;;  %v298_v30 = vadd.f32 %v296_v22, %v284_v10  ;;  %v325_v33 = vrot.slane %v323_v25, 1  ;;  %v331_v40 = vadd.f32 %v291_v13, %v282_v8 }
  0x78   :  { %v341_v34 = vsub.f32 %v336_v27, %v339_v28  ;;  %v315_v36 = vsub.f32 %v307_v29, %v313_v31  ;;  %v329_v38 = vadd.f32 %v313_v31, %v307_v29 }
  0x79   :  { %v293_v18 = vadd.f32 %v291_v13, %v288_v14  ;;  %v300_v35 = vrot.slane %v298_v30, 1  ;;  %v327_v37 = vadd.f32 %v325_v33, %v320_v32 }
  0x7a   :  { %v343_v41 = vrot.slane %v341_v34, 1 }
  0x7b   :  { %448 = vrcp.f32 %v293_v18 }
  0x85   :  { %v449_v39 = vpop.eup %448 }
  0x86   :  { %v295_v42 = vmul.f32 2.0, %v449_v39 }
  0x88   :  { %v302_v43 = vmul.f32 %v300_v35, %v295_v42  ;;  %v316_v44 = vmul.f32 %v315_v36, %v295_v42  ;;  %v328_v45 = vmul.f32 %v327_v37, %v295_v42  ;;  %v330_v46 = vmul.f32 %v329_v38, %v295_v42 }
  0x89   :  { %v332_v47 = vmul.f32 %v331_v40, %v295_v42  ;;  %v345_v48 = vmul.f32 %v343_v41, %v295_v42 }
  0x8a   :  { %v303_v26 = vsub.f32 1.0, %v302_v43  ;;  %v353_v49 = vrot.slane %v316_v44, 3  ;;  %v359_v50 = vrot.slane %v328_v45, 3  ;;  %v365_v51 = vrot.slane %v330_v46, 3 }
  0x8b   :  { %v333_v52 = vsub.f32 1.0, %v332_v47  ;;  %v377_v60 = vrot.slane %v345_v48, 3 }
  0x8c   :  { %v347_v53 = vrot.slane %v303_v26, 3  ;;  %v355_v54 = vsub.f32 %v316_v44, %v353_v49  ;;  %v361_v55 = vsub.f32 %v328_v45, %v359_v50  ;;  %v367_v59 = vsub.f32 %v330_v46, %v365_v51 }
  0x8d   :  { %v371_v56 = vrot.slane %v333_v52, 3  ;;  %v379_v3 = vsub.f32 %v345_v48, %v377_v60 }
  0x8e   :  { %v349_v57 = vsub.f32 %v303_v26, %v347_v53  ;;  %v356_v58 = vmul.f32 %v355_v54, %v355_v54  ;;  %v362_v62 = vmul.f32 %v361_v55, %v361_v55  ;;  %v368_v2 = vmul.f32 %v367_v59, %v367_v59 }
  0x8f   :  { %v373_v63 = vsub.f32 %v333_v52, %v371_v56  ;;  %v380_v20 = vmul.f32 %v379_v3, %v379_v3 }
  0x90   :  { %v350_v61 = vmul.f32 %v349_v57, %v349_v57 }
  0x91   :  { %v374_v5 = vmul.f32 %v373_v63, %v373_v63 }
  0x92   :  { %v357_v0 = vadd.f32 %v356_v58, %v350_v61 }
  0x94   :  { %v363_v4 = vadd.f32 %v362_v62, %v357_v0 }
  0x96   :  { %v369_v6 = vadd.f32 %v368_v2, %v363_v4 }
  0x98   :  { %v375_v7 = vadd.f32 %v374_v5, %v369_v6 }
  0x9a   :  { %v381_v8 = vadd.f32 %v380_v20, %v375_v7 }
  0x9c   :  { %v383_v9 = vrot.slane %v381_v8, 2 }
  0x9e   :  { %v385_v10 = vmul.f32 %v383_v9, %v490_v1 }
  0xa0   :  { %v387_v11 = vrot.slane %v385_v10, 6 }
  0xa2   :  { %v389_v12 = vsel %vm29_vm2, %v387_v11, 0.0 }
  0xa3   :  { %390 = vadd.xlane.f32.xlu0 %v389_v12 }
  0xad   :  { %v32_v13 = vpop.xlane.xlu0 %31 }
  0xae   :  { %v33_v14 = vrot.slane %v32_v13, 4 }
  0xb0   :  { %v34_v15 = vadd.f32 %v33_v14, %v32_v13 }
  0xb2   :  { %v35_v16 = vrot.slane %v34_v15, 2 }
  0xb4   :  { %v36_v18 = vadd.f32 %v35_v16, %v34_v15 }
  0xb6   :  { %v37_v17 = vrot.slane %v36_v18, 1 }
  0xb8   :  { %v38_v19 = vadd.f32 %v37_v17, %v36_v18 }
  0xba   :  { %423 = vpush %v38_v19 }
  0xeb   :  { %s424_s0 = spop %423 }
 0x130   :  { %v391_v21 = vpop.xlane.xlu0 %390 }
 0x131   :  { %v392_v22 = vrot.slane %v391_v21, 4 }
 0x133   :  { %v393_v23 = vadd.f32 %v392_v22, %v391_v21 }
 0x135   :  { %v394_v24 = vrot.slane %v393_v23, 2 }
 0x137   :  { %v395_v25 = vadd.f32 %v394_v24, %v393_v23 }
 0x139   :  { %v396_v27 = vrot.slane %v395_v25, 1 }
 0x13b   :  { %v397_v28 = vadd.f32 %v396_v27, %v395_v25 }
 0x13d   :  { %429 = vpush %v397_v28 }
 0x16e   :  { %s430_s1 = spop %429 }
 0x16f   :  { %s399_s13 = sadd.f32 %s430_s1, %s424_s0 }
 0x171   :  { %401 = sst [smem:[#allocation2]] %s399_s13 }
 0x172   :  { %459 = shalt.err (!%p456_p2)
}
 0x173   :  { %s468_s21 = smov [#allocation2]  }
 0x174   :  { %409 = dma.smem_to_hbm %s468_s21, 16, %s546_s2, [#allocation3]  }
 0x175   :  { %460 = dma.done.wait [#allocation3], 16  }
 0x176   :  { %461 = vsyncadd [#allocation3], 4294967280 }
 0x177   :  { %413 = sfence }
 0x178   :  { %414 = vsyncpa [#allocation3], 1 }

</bundles_post_ra>
